<compile_context>
chip_gen: v5e
topology: v5e:2x2
jax: 0.10.0
libtpu: 0.0.40
codegen_flags: <defaults>
</compile_context>

<pallas_src>
import jax
import jax.numpy as jnp
from jax.experimental import pallas as pl
from jax.experimental.pallas import tpu as pltpu


# ----------------------------- Pallas kernel -------------------------------


def attention_kernel(z_ref, w1t_ref, c_ref, out_ref, beta_ref):
    """One grid step processes TB batch elements, fully VMEM-resident.

    z_ref:    (1, TB*N, D)  flattened slab of TB batch elements
    w1t_ref:  (D, H)        first Linear weight, pre-transposed
    c_ref:    (2, H)        row 0 = b1 (first Linear bias), row 1 = w2 (second Linear weight)
    out_ref:  (TB, 1, D)    attention-pooled outputs
    beta_ref: (TB, 1, N)    attention weights, lane-dense (N on the lane axis)
    """
    TB = out_ref.shape[0]
    N = beta_ref.shape[2]

    zf = z_ref[0]                                   # (TB*N, D)
    b1 = c_ref[0:1, :]                              # (1, H)
    w2 = c_ref[1:2, :]                              # (1, H)

    # Projection for ALL TB*N rows in one MXU matmul; tanh on the EUP.
    h = jnp.tanh(
        jnp.dot(zf, w1t_ref[...], preferred_element_type=jnp.float32) + b1
    )                                               # (TB*N, H)

    # Scores: row-vector weight -> elementwise mul + lane reduction, then one
    # small transpose so the per-batch scores sit on the lane axis.
    s_col = jnp.sum(h * w2, axis=1, keepdims=True)  # (TB*N, 1)
    s_row = s_col.T                                 # (1, TB*N)

    # Per-batch softmax over N (lane axis) + MXU pooling; TB is tiny and known
    # at trace time, so this unrolls inside the single grid step (no per-step
    # pipeline overhead, unlike the old grid=(B,) loop).
    for b in range(TB):
        sb = s_row[:, b * N:(b + 1) * N]            # (1, N)
        m = jnp.max(sb, axis=1, keepdims=True)      # (1, 1)
        e = jnp.exp(sb - m)                         # (1, N)
        denom = jnp.sum(e, axis=1, keepdims=True)   # (1, 1)
        beta_b = e * pl.reciprocal(denom, approx=False)   # (1, N), rows sum to 1

        zb = zf[b * N:(b + 1) * N, :]               # (N, D)
        out_ref[b] = jnp.dot(
            beta_b, zb, preferred_element_type=jnp.float32
        ).astype(out_ref.dtype)                     # (1, D) on the MXU
        beta_ref[b] = beta_b.astype(beta_ref.dtype)  # lane-dense store


# ----------------------------- wrapper --------------------------------------


def _grid_steps_for(batch):
    """1 step on single-TensorCore parts (v5e/v6e); 2 parallel steps on v7x."""
    steps = 1
    try:
        kind = jax.devices()[0].device_kind.lower()
        if "v7" in kind or "7x" in kind:
            steps = 2
    except Exception:
        steps = 1
    if steps > 1 and (batch < steps or batch % steps != 0):
        steps = 1
    return steps


def _attention_forward(z, params):
    B, N, D = z.shape
    w1t, c = params["w1t"], params["c"]
    H = w1t.shape[1]

    steps = _grid_steps_for(B)
    TB = B // steps

    # Flatten batch*N in the wrapper (free metadata reshape) so the kernel sees
    # a single lane/sublane-dense slab per step and needs no in-kernel reshape.
    z_steps = z.reshape(steps, TB * N, D)

    out3, beta3 = pl.pallas_call(
        attention_kernel,
        grid=(steps,),
        in_specs=[
            pl.BlockSpec((1, TB * N, D), lambda i: (i, 0, 0)),
            pl.BlockSpec((D, H), lambda i: (0, 0)),
            pl.BlockSpec((2, H), lambda i: (0, 0)),
        ],
        out_specs=[
            pl.BlockSpec((TB, 1, D), lambda i: (i, 0, 0)),
            pl.BlockSpec((TB, 1, N), lambda i: (i, 0, 0)),
        ],
        out_shape=[
            jax.ShapeDtypeStruct((B, 1, D), jnp.float32),
            jax.ShapeDtypeStruct((B, 1, N), jnp.float32),
        ],
        compiler_params=pltpu.CompilerParams(
            dimension_semantics=("parallel",)),
    )(z_steps, w1t, c)

    out = out3.reshape(B, D)
    beta = beta3.reshape(B, N, 1)   # (B,1,N) -> (B,N,1): same element order
    return out, beta


attention_forward = jax.jit(_attention_forward)


# ----------------------------- params / reference ---------------------------


def init_params(key, in_size, hidden_size):
    """PyTorch-style init U(-1/sqrt(fan_in), 1/sqrt(fan_in)); stored in the
    kernel-ready layout: pre-transposed w1 and [b1; w2] packed into one (2,H)."""
    k1, k2, k3 = jax.random.split(key, 3)
    b1v = 1.0 / float(in_size) ** 0.5
    b2v = 1.0 / float(hidden_size) ** 0.5
    w1 = jax.random.uniform(k1, (hidden_size, in_size), minval=-b1v, maxval=b1v)
    b1 = jax.random.uniform(k2, (hidden_size,), minval=-b1v, maxval=b1v)
    w2 = jax.random.uniform(k3, (1, hidden_size), minval=-b2v, maxval=b2v)
    c = jnp.concatenate(
        [b1.reshape(1, hidden_size), w2.reshape(1, hidden_size)], axis=0)
    return {
        "w1t": jnp.transpose(w1).astype(jnp.float32),  # (D, H)
        "c": c.astype(jnp.float32),                    # (2, H) = [b1; w2]
    }


def attention_ref(z, params):
    """Pure-JAX reference mirroring the torch module, for validation."""
    b1 = params["c"][0]                                # (H,)
    w2 = params["c"][1]                                # (H,)
    h = jnp.tanh(z @ params["w1t"] + b1)               # (B, N, H)
    w = h @ w2[:, None]                                # (B, N, 1)
    beta = jax.nn.softmax(w, axis=1)
    return (beta * z).sum(axis=1), beta


# ----------------------------- main ------------------------------------------

if __name__ == "__main__":
    # Small shapes consistent with the module: batch=2, N=4 "views" to attend
    # over, in_size=16, hidden_size=16 (module default).
    B, N, IN_SIZE, HIDDEN = 2, 4, 16, 16

    key = jax.random.PRNGKey(0)
    kz, kp = jax.random.split(key)
    z = jax.random.normal(kz, (B, N, IN_SIZE), dtype=jnp.float32)
    params = init_params(kp, IN_SIZE, HIDDEN)

    out, beta = attention_forward(z, params)
    out, beta = jax.block_until_ready((out, beta))

    ref_out, ref_beta = attention_ref(z, params)
    assert out.shape == (B, IN_SIZE), out.shape
    assert beta.shape == (B, N, 1), beta.shape
    assert jnp.allclose(out, ref_out, atol=1e-5, rtol=1e-4), \
        f"max abs err out = {jnp.max(jnp.abs(out - ref_out))}"
    assert jnp.allclose(beta, ref_beta, atol=1e-5, rtol=1e-4), \
        f"max abs err beta = {jnp.max(jnp.abs(beta - ref_beta))}"

    print("KERNEL_OK")
</pallas_src>

<mosaic_0001>
module attributes {stable_mosaic.version = 11 : i64} {
  func.func @attention_kernel(%arg0: i32, %arg1: memref<1x8x16xf32, #tpu.memory_space<vmem>>, %arg2: memref<16x16xf32, #tpu.memory_space<vmem>>, %arg3: memref<2x16xf32, #tpu.memory_space<vmem>>, %arg4: memref<2x1x16xf32, #tpu.memory_space<vmem>>, %arg5: memref<2x1x4xf32, #tpu.memory_space<vmem>>) attributes {dimension_semantics = [#tpu.dimension_semantics<parallel>], iteration_bounds = array<i64: 1>, scalar_prefetch = 0 : i64, scratch_operands = 0 : i64, tpu.core_type = #tpu.core_type<tc>, window_params = [{transform_indices = @transform_0, window_bounds = array<i64: 1, 8, 16>}, {pipeline_mode = #tpu.pipeline_mode<synchronous>, transform_indices = @transform_1, window_bounds = array<i64: 16, 16>}, {pipeline_mode = #tpu.pipeline_mode<synchronous>, transform_indices = @transform_2, window_bounds = array<i64: 2, 16>}, {transform_indices = @transform_3, window_bounds = array<i64: 2, 1, 16>}, {transform_indices = @transform_4, window_bounds = array<i64: 2, 1, 4>}]} {
    %c0 = arith.constant 0 : index
    %c0_0 = arith.constant 0 : index
    %c0_1 = arith.constant 0 : index
    %0 = vector.load %arg1[%c0, %c0_0, %c0_1] : memref<1x8x16xf32, #tpu.memory_space<vmem>>, vector<1x8x16xf32>
    %1 = vector.shape_cast %0 : vector<1x8x16xf32> to vector<8x16xf32>
    %c0_2 = arith.constant 0 : index
    %c0_3 = arith.constant 0 : index
    %2 = vector.load %arg3[%c0_2, %c0_3] : memref<2x16xf32, #tpu.memory_space<vmem>>, vector<1x16xf32>
    %c1 = arith.constant 1 : index
    %c0_4 = arith.constant 0 : index
    %3 = vector.load %arg3[%c1, %c0_4] : memref<2x16xf32, #tpu.memory_space<vmem>>, vector<1x16xf32>
    %c0_5 = arith.constant 0 : index
    %c0_6 = arith.constant 0 : index
    %4 = vector.load %arg2[%c0_5, %c0_6] : memref<16x16xf32, #tpu.memory_space<vmem>>, vector<16x16xf32>
    %cst = arith.constant dense<0.000000e+00> : vector<8x16xf32>
    %5 = tpu.matmul %1, %4, %cst {dimension_numbers = #tpu.dot_dimension_numbers<[1], [0], [0], [1], [0, 0, 1, 1], [], []>} : vector<8x16xf32>, vector<16x16xf32>, vector<8x16xf32> -> vector<8x16xf32>
    %6 = vector.broadcast %2 : vector<1x16xf32> to vector<8x16xf32>
    %7 = arith.addf %5, %6 : vector<8x16xf32>
    %8 = math.tanh %7 : vector<8x16xf32>
    %9 = vector.broadcast %3 : vector<1x16xf32> to vector<8x16xf32>
    %10 = arith.mulf %8, %9 : vector<8x16xf32>
    %cst_7 = arith.constant dense<0.000000e+00> : vector<8xf32>
    %11 = vector.multi_reduction <add>, %10, %cst_7 [1] : vector<8x16xf32> to vector<8xf32>
    %12 = vector.shape_cast %11 : vector<8xf32> to vector<8x1xf32>
    %13 = tpu.transpose %12, [1, 0] : vector<8x1xf32> -> vector<1x8xf32>
    %14 = vector.extract_strided_slice %13 {offsets = [0, 0], sizes = [1, 4], strides = [1, 1]} : vector<1x8xf32> to vector<1x4xf32>
    %cst_8 = arith.constant dense<0xFF800000> : vector<1xf32>
    %15 = vector.multi_reduction <maximumf>, %14, %cst_8 [1] : vector<1x4xf32> to vector<1xf32>
    %16 = vector.shape_cast %15 : vector<1xf32> to vector<1x1xf32>
    %17 = vector.broadcast %16 : vector<1x1xf32> to vector<1x4xf32>
    %18 = arith.subf %14, %17 : vector<1x4xf32>
    %19 = math.exp %18 : vector<1x4xf32>
    %cst_9 = arith.constant dense<0.000000e+00> : vector<1xf32>
    %20 = vector.multi_reduction <add>, %19, %cst_9 [1] : vector<1x4xf32> to vector<1xf32>
    %21 = vector.shape_cast %20 : vector<1xf32> to vector<1x1xf32>
    %22 = tpu.reciprocal %21 : vector<1x1xf32> -> vector<1x1xf32>
    %23 = vector.broadcast %22 : vector<1x1xf32> to vector<1x4xf32>
    %24 = arith.mulf %19, %23 : vector<1x4xf32>
    %25 = vector.extract_strided_slice %1 {offsets = [0, 0], sizes = [4, 16], strides = [1, 1]} : vector<8x16xf32> to vector<4x16xf32>
    %cst_10 = arith.constant dense<0.000000e+00> : vector<1x16xf32>
    %26 = tpu.matmul %24, %25, %cst_10 {dimension_numbers = #tpu.dot_dimension_numbers<[1], [0], [0], [1], [0, 0, 1, 1], [], []>} : vector<1x4xf32>, vector<4x16xf32>, vector<1x16xf32> -> vector<1x16xf32>
    %c0_11 = arith.constant 0 : index
    %c0_12 = arith.constant 0 : index
    %c0_13 = arith.constant 0 : index
    %27 = vector.load %arg4[%c0_11, %c0_12, %c0_13] : memref<2x1x16xf32, #tpu.memory_space<vmem>>, vector<1x1x16xf32>
    %28 = vector.shape_cast %27 : vector<1x1x16xf32> to vector<1x16xf32>
    %29 = vector.shape_cast %26 : vector<1x16xf32> to vector<1x1x16xf32>
    tpu.vector_store %arg4[%c0_11, %c0_12, %c0_13], %29 {strides = array<i32>} : memref<2x1x16xf32, #tpu.memory_space<vmem>>, vector<1x1x16xf32>,
    %c0_14 = arith.constant 0 : index
    %c0_15 = arith.constant 0 : index
    %c0_16 = arith.constant 0 : index
    %30 = vector.load %arg5[%c0_14, %c0_15, %c0_16] : memref<2x1x4xf32, #tpu.memory_space<vmem>>, vector<1x1x4xf32>
    %31 = vector.shape_cast %30 : vector<1x1x4xf32> to vector<1x4xf32>
    %32 = vector.shape_cast %24 : vector<1x4xf32> to vector<1x1x4xf32>
    tpu.vector_store %arg5[%c0_14, %c0_15, %c0_16], %32 {strides = array<i32>} : memref<2x1x4xf32, #tpu.memory_space<vmem>>, vector<1x1x4xf32>,
    %33 = vector.extract_strided_slice %13 {offsets = [0, 4], sizes = [1, 4], strides = [1, 1]} : vector<1x8xf32> to vector<1x4xf32>
    %cst_17 = arith.constant dense<0xFF800000> : vector<1xf32>
    %34 = vector.multi_reduction <maximumf>, %33, %cst_17 [1] : vector<1x4xf32> to vector<1xf32>
    %35 = vector.shape_cast %34 : vector<1xf32> to vector<1x1xf32>
    %36 = vector.broadcast %35 : vector<1x1xf32> to vector<1x4xf32>
    %37 = arith.subf %33, %36 : vector<1x4xf32>
    %38 = math.exp %37 : vector<1x4xf32>
    %cst_18 = arith.constant dense<0.000000e+00> : vector<1xf32>
    %39 = vector.multi_reduction <add>, %38, %cst_18 [1] : vector<1x4xf32> to vector<1xf32>
    %40 = vector.shape_cast %39 : vector<1xf32> to vector<1x1xf32>
    %41 = tpu.reciprocal %40 : vector<1x1xf32> -> vector<1x1xf32>
    %42 = vector.broadcast %41 : vector<1x1xf32> to vector<1x4xf32>
    %43 = arith.mulf %38, %42 : vector<1x4xf32>
    %44 = vector.extract_strided_slice %1 {offsets = [4, 0], sizes = [4, 16], strides = [1, 1]} : vector<8x16xf32> to vector<4x16xf32>
    %cst_19 = arith.constant dense<0.000000e+00> : vector<1x16xf32>
    %45 = tpu.matmul %43, %44, %cst_19 {dimension_numbers = #tpu.dot_dimension_numbers<[1], [0], [0], [1], [0, 0, 1, 1], [], []>} : vector<1x4xf32>, vector<4x16xf32>, vector<1x16xf32> -> vector<1x16xf32>
    %c1_20 = arith.constant 1 : index
    %c0_21 = arith.constant 0 : index
    %c0_22 = arith.constant 0 : index
    %46 = vector.load %arg4[%c1_20, %c0_21, %c0_22] : memref<2x1x16xf32, #tpu.memory_space<vmem>>, vector<1x1x16xf32>
    %47 = vector.shape_cast %46 : vector<1x1x16xf32> to vector<1x16xf32>
    %48 = vector.shape_cast %45 : vector<1x16xf32> to vector<1x1x16xf32>
    tpu.vector_store %arg4[%c1_20, %c0_21, %c0_22], %48 {strides = array<i32>} : memref<2x1x16xf32, #tpu.memory_space<vmem>>, vector<1x1x16xf32>,
    %c1_23 = arith.constant 1 : index
    %c0_24 = arith.constant 0 : index
    %c0_25 = arith.constant 0 : index
    %49 = vector.load %arg5[%c1_23, %c0_24, %c0_25] : memref<2x1x4xf32, #tpu.memory_space<vmem>>, vector<1x1x4xf32>
    %50 = vector.shape_cast %49 : vector<1x1x4xf32> to vector<1x4xf32>
    %51 = vector.shape_cast %43 : vector<1x4xf32> to vector<1x1x4xf32>
    tpu.vector_store %arg5[%c1_23, %c0_24, %c0_25], %51 {strides = array<i32>} : memref<2x1x4xf32, #tpu.memory_space<vmem>>, vector<1x1x4xf32>,
    return
  }
  func.func @transform_0(%arg0: i32) -> (i32, i32, i32) {
    %c0_i32 = arith.constant 0 : i32
    %c0_i32_0 = arith.constant 0 : i32
    %c0_i32_1 = arith.constant 0 : i32
    return %arg0, %c0_i32, %c0_i32_0 : i32, i32, i32
  }
  func.func @transform_1(%arg0: i32) -> (i32, i32) {
    %c0_i32 = arith.constant 0 : i32
    %c0_i32_0 = arith.constant 0 : i32
    %c0_i32_1 = arith.constant 0 : i32
    return %c0_i32, %c0_i32_0 : i32, i32
  }
  func.func @transform_2(%arg0: i32) -> (i32, i32) {
    %c0_i32 = arith.constant 0 : i32
    %c0_i32_0 = arith.constant 0 : i32
    %c0_i32_1 = arith.constant 0 : i32
    return %c0_i32, %c0_i32_0 : i32, i32
  }
  func.func @transform_3(%arg0: i32) -> (i32, i32, i32) {
    %c0_i32 = arith.constant 0 : i32
    %c0_i32_0 = arith.constant 0 : i32
    %c0_i32_1 = arith.constant 0 : i32
    return %arg0, %c0_i32, %c0_i32_0 : i32, i32, i32
  }
  func.func @transform_4(%arg0: i32) -> (i32, i32, i32) {
    %c0_i32 = arith.constant 0 : i32
    %c0_i32_0 = arith.constant 0 : i32
    %c0_i32_1 = arith.constant 0 : i32
    return %arg0, %c0_i32, %c0_i32_0 : i32, i32, i32
  }
}

</mosaic_0001>

<bundles_post_ra>
// kernel: _attention_forward.1
= control target key start
LH: loop header
LB: loop body
LE: loop exit
PB: predicated region body
PF: predicated region fallthrough
CT: control target
= control target key end

     0   :  { %10 = vsyncpa [#allocation3], 0  ;;  %s497_s0 = inlined_call_operand.hbm [shape: f32[1,8,16], index: 0, kind: input, shape index: {}]   ;;  %s498_s1 = inlined_call_operand.hbm [shape: f32[16,16], index: 1, kind: input, shape index: {}]   ;;  %s499_s2 = inlined_call_operand.hbm [shape: f32[2,16], index: 2, kind: input, shape index: {}]   ;;  %s500_s3 = inlined_call_operand.hbm [shape: f32[2,1,16], index: 3, kind: output, shape index: {0}]   ;;  %s501_s4 = inlined_call_operand.hbm [shape: f32[2,1,4], index: 4, kind: output, shape index: {1}]  }
   0x1   :  { %11 = vsyncpa [#allocation6], 0 }
   0x2   :  { %12 = vsyncpa [#allocation4], 0  ;;  %s29_s17 = sshll.u32 %s498_s1, 4  ;;  %s30_s17 = int_to_ptr.hbm [resolvable:$true] %s29_s17 }
   0x3   :  { %13 = vsyncpa [#allocation10], 0  ;;  %s440_s18 = smov [#allocation5]   ;;  %s19_s22 = sshll.u32 %s497_s0, 4  ;;  %s20_s22 = int_to_ptr.hbm [resolvable:$true] %s19_s22 }
   0x4   :  { %s31_s19 = sshll.u32 %s440_s18, 4  ;;  %s441_s23 = smov 128   ;;  %s32_s19 = int_to_ptr.vmem [resolvable:$true] %s31_s19 }
   0x5   :  { %s442_s24 = smov 8   ;;  %s443_s25 = smov [#allocation2]  }
   0x6   :  { %37 = dma.hbm_to_vmem [thread:$0]  %s30_s17, 256, %s32_s19, [#allocation6], %s441_s23, %s441_s23, %s442_s24  }
   0x7   :  { %s21_s26 = sshll.u32 %s443_s25, 4  ;;  %s43_s29 = sshll.u32 %s499_s2, 4  ;;  %s22_s26 = int_to_ptr.vmem [resolvable:$true] %s21_s26  ;;  %s44_s29 = int_to_ptr.hbm [resolvable:$true] %s43_s29 }
   0x8   :  { %24 = dma.hbm_to_vmem [thread:$0]  %s20_s22, 128, %s22_s26, [#allocation3]  }
   0x9   :  { %s444_s1 = smov [#allocation7]  }
   0xa   :  { %s45_s30 = sshll.u32 %s444_s1, 4  ;;  %s46_s30 = int_to_ptr.vmem [resolvable:$true] %s45_s30 }
   0xb   :  { %48 = dma.hbm_to_vmem [thread:$0]  %s44_s29, 32, %s46_s30, [#allocation6]  }
   0xc   :  { %432 = dma.done.wait [#allocation3], 128  }
   0xd   :  { %433 = vsyncadd [#allocation3], 4294967168 }
   0xe   :  { %434 = dma.done.wait [#allocation6], 288  }
   0xf   :  { %435 = vsyncadd [#allocation6], 4294967008  ;;  %v65_v0 = vld [vmem:[#allocation5 + $0x8] sm:$0xff]  ;;  %v64_v1 = vld [vmem:[#allocation5] sm:$0xff]  ;;  %vm67_vm0 = vcmask 130048   ;;  %vm184_vm1 = vcmask 57376  }
  0x10   :  { %85 = vmatpush.msra.mxu0 %v65_v0  ;;  %v61_v2 = vld [vmem:[#allocation2] sm:$0xff]  ;;  %v300_v3 = vld [vmem:[#allocation7] ss:$0 sm:$0xff]  ;;  %v301_v6 = vld [vmem:[#allocation7 + $0x1] ss:$0 sm:$0xff]  ;;  %vm129_vm2 = vcmask 24576  }
  0x11   :  { %s445_s0 = smov 124   ;;  %vm158_vm3 = vcmask 1043456   ;;  %v216_v25 = vrot.slane %v61_v2, 4  ;;  %vm154_vm12 = vcmask 31744   ;;  %s446_s2 = smov [#allocation9]   ;;  %vm181_vm13 = vcmask 122880  }
  0x12   :  { %86 = vmatpush.msra.mxu0 %v64_v1  ;;  %285 = vmatpush.msk.msra.mxu1 %vm158_vm3, %v61_v2  ;;  %s263_s5 = sshll.u32 %s446_s2, 4  ;;  %s265_s8 = sshll.u32 %s501_s4, 4  ;;  %s264_s5 = int_to_ptr.vmem [resolvable:$true] %s263_s5  ;;  %s266_s8 = int_to_ptr.hbm [resolvable:$true] %s265_s8 }
  0x13   :  { %284 = vmatmul.msk.f32.vlgmr.msra.gmra.mxu0 %vm67_vm0, %v61_v2  ;;  %287 = vmatpush.msk.msra.mxu2 %vm158_vm3, %v216_v25  ;;  %s447_s9 = smov 16   ;;  %s448_s10 = smov 1  }
  0x14   :  { %s449_s11 = smov [#allocation8]   ;;  %s252_s15 = sshll.u32 %s500_s3, 4  ;;  %s253_s15 = int_to_ptr.hbm [resolvable:$true] %s252_s15 }
  0x15   :  { %s250_s12 = sshll.u32 %s449_s11, 4  ;;  %s251_s12 = int_to_ptr.vmem [resolvable:$true] %s250_s12 }
  0x90   :  { %v88_v4 = vpop.f32.mrf.mxu0 }
  0x91   :  { %v89_v5 = vadd.f32 %v300_v3, %v88_v4 }
  0x93   :  { %302 = vtanh.f32 %v89_v5 }
  0x99   :  { %v303_v7 = vpop.eup %302 }
  0x9a   :  { %v93_v8 = vmul.f32 %v303_v7, %v301_v6 }
  0x9c   :  { %v94_v9 = vsel %vm67_vm0, %v93_v8, 0.0 }
  0x9d   :  { %95 = vadd.xlane.f32.xlu0 %v94_v9 }
 0x110   :  { %v96_v10 = vpop.xlane.xlu0 %95 }
 0x111   :  { %97 = vxpose.xlu0.b32.start.end [1/1] (short) (narrow) %v96_v10, 8 }
 0x1b5   :  { %v113_v11 = vpop.trf.xlu0 }
 0x1b6   :  { %v185_v12 = vsel %vm184_vm1, %v113_v11, -inf  ;;  %v130_v13 = vsel %vm129_vm2, %v113_v11, -inf }
 0x1b7   :  { %186 = vmax.xlane.f32.xlu1 %v185_v12  ;;  %131 = vmax.xlane.f32.xlu2 %v130_v13 }
 0x22a   :  { %v187_v14 = vpop.xlane.xlu1 %186  ;;  %v132_v18 = vpop.xlane.xlu2 %131 }
 0x22b   :  { %v188_v15 = vsub.f32 %v113_v11, %v187_v14  ;;  %v133_v19 = vsub.f32 %v113_v11, %v132_v18 }
 0x22d   :  { %v189_v16 = vmul.f32 1.442695, %v188_v15  ;;  %v134_v20 = vmul.f32 1.442695, %v133_v19 }
 0x22f   :  { %304 = vpow2.f32 %v189_v16 }
 0x230   :  { %306 = vpow2.f32 %v134_v20 }
 0x235   :  { %v305_v17 = vpop.eup %304 }
 0x236   :  { %192 = vrot.lane.b32.xlu1 %v305_v17, %s445_s0  ;;  %v307_v23 = vpop.eup %306 }
 0x237   :  { %v136_v24 = vsel %vm129_vm2, %v307_v23, 0.0 }
 0x2a8   :  { %v193_v21 = vpop.permute.xlu1 %192 }
 0x2a9   :  { %v195_v22 = vsel %vm129_vm2, %v193_v21, 0.0 }
 0x2aa   :  { %196 = vadd.xlane.f32.xlu2 %v195_v22 }
 0x2b2   :  { %137 = vadd.xlane.f32.xlu2 %v136_v24 }
 0x31d   :  { %v197_v26 = vpop.xlane.xlu2 %196 }
 0x31e   :  { %308 = vrcp.f32 %v197_v26  ;;  %v209_v31 = vand.u32 2147483648, %v197_v26  ;;  %v207_v33 = vand.u32 2147483647, %v197_v26  ;;  %vm203_vm5 = vweird.f32 %v197_v26 }
 0x320   :  { %v210_v36 = vor.u32 1.1754944e-38, %v209_v31  ;;  %vm208_vm7 = vcmp.eq.f32.partialorder %v207_v33, 8.507059e+37 }
 0x324   :  { %v309_v27 = vpop.eup %308 }
 0x325   :  { %v199_v28 = vmul.f32 %v309_v27, %v197_v26  ;;  %v138_v29 = vpop.xlane.xlu2 %137  ;;  %vm204_vm4 = vweird.f32 %v309_v27 }
 0x326   :  { %310 = vrcp.f32 %v138_v29  ;;  %vm205_vm6 = vmor %vm203_vm5, %vm204_vm4  ;;  %v150_v42 = vand.u32 2147483648, %v138_v29  ;;  %v148_v44 = vand.u32 2147483647, %v138_v29  ;;  %vm144_vm9 = vweird.f32 %v138_v29 }
 0x327   :  { %v200_v30 = vsub.f32 1.0, %v199_v28 }
 0x328   :  { %v151_v46 = vor.u32 1.1754944e-38, %v150_v42  ;;  %vm149_vm11 = vcmp.eq.f32.partialorder %v148_v44, 8.507059e+37 }
 0x329   :  { %v201_v32 = vmul.f32 %v309_v27, %v200_v30 }
 0x32b   :  { %v202_v34 = vadd.f32 %v309_v27, %v201_v32 }
 0x32c   :  { %v311_v35 = vpop.eup %310 }
 0x32d   :  { %v140_v37 = vmul.f32 %v311_v35, %v138_v29  ;;  %v206_v38 = vsel %vm205_vm6, %v309_v27, %v202_v34  ;;  %vm145_vm8 = vweird.f32 %v311_v35 }
 0x32e   :  { %v211_v39 = vsel %vm208_vm7, %v210_v36, %v206_v38  ;;  %vm146_vm10 = vmor %vm144_vm9, %vm145_vm8 }
 0x32f   :  { %v141_v40 = vsub.f32 1.0, %v140_v37  ;;  %v212_v41 = vmul.f32 %v305_v17, %v211_v39 }
 0x331   :  { %v142_v43 = vmul.f32 %v311_v35, %v141_v40  ;;  %214 = vrot.lane.b32.xlu2 %v212_v41, %s445_s0 }
 0x333   :  { %v143_v45 = vadd.f32 %v311_v35, %v142_v43 }
 0x335   :  { %v147_v47 = vsel %vm146_vm10, %v311_v35, %v143_v45 }
 0x336   :  { %v152_v48 = vsel %vm149_vm11, %v151_v46, %v147_v47 }
 0x337   :  { %v153_v49 = vmul.f32 %v307_v23, %v152_v48 }
 0x339   :  { %286 = vmatmul.msk.f32.vlgmr.msra.gmra.mxu1 %vm154_vm12, %v153_v49  ;;  %183 = vst.msk [vmem:[#allocation9] sm:$0x1] %vm129_vm2, %v153_v49 }
 0x38b   :  { %v215_v50 = vpop.permute.xlu2 %214 }
 0x38c   :  { %245 = vst.msk [vmem:[#allocation9 + $0x1] sm:$0x1] %vm129_vm2, %v215_v50  ;;  %288 = vmatmul.msk.f32.vlgmr.msra.gmra.mxu2 %vm154_vm12, %v215_v50 }
 0x38d   :  { %271 = dma.vmem_to_hbm [thread:$0]  %s264_s5, 32, %s266_s8, [#allocation10], %s447_s9, %s447_s9, %s448_s10  }
 0x3b6   :  { %v178_v51 = vpop.f32.mrf.mxu1 }
 0x3b7   :  { %182 = vst.msk [vmem:[#allocation8] sm:$0x1] %vm181_vm13, %v178_v51 }
 0x40f   :  { %v238_v52 = vpop.f32.mrf.mxu2 }
 0x410   :  { %242 = vst.msk [vmem:[#allocation8 + $0x1] sm:$0x1] %vm181_vm13, %v238_v52 }
 0x411   :  { %258 = dma.vmem_to_hbm [thread:$0]  %s251_s12, 32, %s253_s15, [#allocation4], %s447_s9, %s447_s9, %s448_s10  }
 0x412   :  { %436 = dma.done.wait [#allocation4], 32  }
 0x413   :  { %437 = vsyncadd [#allocation4], 4294967264 }
 0x414   :  { %438 = dma.done.wait [#allocation10], 32  }
 0x415   :  { %439 = vsyncadd [#allocation10], 4294967264 }
 0x416   :  { %280 = vsyncpa [#allocation3], 1 }
 0x417   :  { %281 = vsyncpa [#allocation6], 1 }
 0x418   :  { %282 = vsyncpa [#allocation4], 1 }
 0x419   :  { %283 = vsyncpa [#allocation10], 1 }

</bundles_post_ra>
